<compile_context>
chip_gen: v5e
topology: v5e:2x2
jax: 0.10.0
libtpu: 0.0.40
codegen_flags: <defaults>
</compile_context>

<pallas_src>
import jax
import jax.numpy as jnp
from jax.experimental import pallas as pl
from jax.experimental.pallas import tpu as pltpu

# True / lane-aligned (padded) feature sizes.
IN_F = 29     # layer-1 in_features (left unpadded; Mosaic masks the K=29 matmul)
H1_T, H1_P = 200, 256   # layer-1 out_features  (padded 200 -> 256)
H2_T, H2_P = 100, 128   # layer-2 out_features  (padded 100 -> 128)


def mlp_kernel(x_ref, w1_ref, b1_ref, w2_ref, b2_ref, w3_ref, b3_ref, o_ref):
    cdt = w1_ref.dtype
    # Layer 1: (TB, 29) @ (29, 256) on the MXU, f32 accumulate; bias + ReLU in f32.
    # The contracting dim (29) is not tile-aligned; Mosaic zero-masks the padding,
    # so x needs no wrapper-side feature pad (and no extra HBM pass).
    h1 = jnp.dot(x_ref[...].astype(cdt), w1_ref[...],
                 preferred_element_type=jnp.float32)
    h1 = jnp.maximum(h1 + b1_ref[...], 0.0)
    # Layer 2: (TB, 256) @ (256, 128), f32 accumulate; bias + ReLU in f32.
    h2 = jnp.dot(h1.astype(w2_ref.dtype), w2_ref[...],
                 preferred_element_type=jnp.float32)
    h2 = jnp.maximum(h2 + b2_ref[...], 0.0)
    # Layer 3 (out_features == 1): contract w3 (1, 128) with h2 (TB, 128) along the
    # lane dim (same dot_general pattern as Q.K^T in flash attention).  The result
    # lands lane-dense as (1, TB), so the output store is a plain unmasked vst.
    out_row = jax.lax.dot_general(
        w3_ref[...], h2.astype(w3_ref.dtype),
        dimension_numbers=(((1,), (1,)), ((), ())),
        preferred_element_type=jnp.float32)                   # (1, TB)
    o_ref[...] = (out_row + b3_ref[...]).astype(o_ref.dtype)  # b3 broadcasts (1,1)


def _round_up(n, m):
    return (n + m - 1) // m * m


def _pad_to(a, shape):
    return jnp.pad(a, [(0, t - s) for s, t in zip(a.shape, shape)])


def _const_spec(a):
    nd = a.ndim
    return pl.BlockSpec(a.shape, lambda i: (0,) * nd)   # same block every grid step


def prepare_params(params, dtype=jnp.float32):
    """Zero-pad params once to lane-aligned output widths; cast weights to `dtype`.

    bf16 weights are recommended on all generations (v5e/v6e/v7x): accumulation and
    the bias/ReLU epilogue stay in f32, so only HBM bytes shrink.  Biases stay f32.
    """
    w1, b1, w2, b2, w3, b3 = params
    return (
        _pad_to(w1, (IN_F, H1_P)).astype(dtype),   # (29, 256), pad cols zero
        _pad_to(b1, (1, H1_P)).astype(jnp.float32),
        _pad_to(w2, (H1_P, H2_P)).astype(dtype),   # (256, 128), pad rows/cols zero
        _pad_to(b2, (1, H2_P)).astype(jnp.float32),
        _pad_to(w3.T, (1, H2_P)).astype(dtype),    # (100, 1) -> (1, 128) row
        b3.astype(jnp.float32),                    # (1, 1)
    )


def interuption_model_forward(x, padded_params, *, tb_max=4096, min_grid=2):
    """x: (B, 29).  padded_params: output of prepare_params().  Returns (B, 1) f32.

    Tile sizing is "balanced-first": choose the number of grid steps, then round
    the tile up to a multiple of 128 (lane-dense output).  min_grid=2 keeps both
    v7x TensorCores busy.  If B is a multiple of the tile, x is passed through with
    zero extra HBM traffic; otherwise only the ragged tail is padded.
    """
    w1, b1, w2, b2, w3, b3 = padded_params
    B = x.shape[0]

    n_steps = max(min_grid, pl.cdiv(B, tb_max))
    tb = _round_up(pl.cdiv(B, n_steps), 128)       # multiple of 128 for lane-dense out
    n_steps = pl.cdiv(B, tb)                       # re-derive after rounding
    b_pad = n_steps * tb

    x_in = x if b_pad == B else jnp.pad(x, ((0, b_pad - B), (0, 0)))

    param_bytes = sum(int(p.size) * p.dtype.itemsize for p in padded_params)
    cost = pl.CostEstimate(
        flops=2 * b_pad * (IN_F * H1_T + H1_T * H2_T + H2_T * 1),
        transcendentals=0,
        bytes_accessed=int(b_pad * IN_F * x_in.dtype.itemsize + b_pad * 4 + param_bytes),
    )

    out = pl.pallas_call(
        mlp_kernel,
        out_shape=jax.ShapeDtypeStruct((1, b_pad), jnp.float32),
        grid=(n_steps,),
        in_specs=[
            pl.BlockSpec((tb, IN_F), lambda i: (i, 0)),   # x: tiled over batch, raw 29
            _const_spec(w1), _const_spec(b1),             # params: VMEM-resident
            _const_spec(w2), _const_spec(b2),
            _const_spec(w3), _const_spec(b3),
        ],
        out_specs=pl.BlockSpec((1, tb), lambda i: (0, i)),  # lane-dense output row
        compiler_params=pltpu.CompilerParams(
            dimension_semantics=("parallel",),            # dual-TC sharding on v7x
            vmem_limit_bytes=32 * 1024 * 1024),           # big tile also fits v5e
        cost_estimate=cost,
    )(x_in, w1, b1, w2, b2, w3, b3)
    return out[0, :B].reshape(B, 1)


def init_params(key):
    """Deterministic init mirroring nn.Linear default U[-1/sqrt(fan_in), 1/sqrt(fan_in)]."""
    dims = [(29, 200), (200, 100), (100, 1)]
    params = []
    for fan_in, fan_out in dims:
        kw, kb, key = jax.random.split(key, 3)
        bound = 1.0 / (fan_in ** 0.5)
        w = jax.random.uniform(kw, (fan_in, fan_out), jnp.float32, -bound, bound)
        b = jax.random.uniform(kb, (1, fan_out), jnp.float32, -bound, bound)
        params += [w, b]
    return params


if __name__ == "__main__":
    key = jax.random.PRNGKey(0)
    kx, kp = jax.random.split(key)
    B = 8
    x = jax.random.normal(kx, (B, 29), jnp.float32)
    params = init_params(kp)

    # Reference (same math as the PyTorch forward), in f32.
    w1, b1, w2, b2, w3, b3 = params
    ref = jnp.maximum(x @ w1 + b1, 0.0)
    ref = jnp.maximum(ref @ w2 + b2, 0.0)
    ref = ref @ w3 + b3

    out = jax.block_until_ready(interuption_model_forward(x, prepare_params(params)))
    assert out.shape == (B, 1)
    assert jnp.allclose(out, ref, atol=1e-3, rtol=1e-3)

    print("KERNEL_OK")
</pallas_src>

<mosaic_0001>
module attributes {stable_mosaic.version = 11 : i64} {
  func.func @mlp_kernel(%arg0: i32, %arg1: memref<128x29xf32, #tpu.memory_space<vmem>>, %arg2: memref<29x256xf32, #tpu.memory_space<vmem>>, %arg3: memref<1x256xf32, #tpu.memory_space<vmem>>, %arg4: memref<256x128xf32, #tpu.memory_space<vmem>>, %arg5: memref<1x128xf32, #tpu.memory_space<vmem>>, %arg6: memref<1x128xf32, #tpu.memory_space<vmem>>, %arg7: memref<1x1xf32, #tpu.memory_space<vmem>>, %arg8: memref<1x128xf32, #tpu.memory_space<vmem>>) attributes {dimension_semantics = [#tpu.dimension_semantics<parallel>], iteration_bounds = array<i64: 1>, scalar_prefetch = 0 : i64, scratch_operands = 0 : i64, tpu.core_type = #tpu.core_type<tc>, window_params = [{transform_indices = @transform_0, window_bounds = array<i64: 128, 29>}, {pipeline_mode = #tpu.pipeline_mode<synchronous>, transform_indices = @transform_1, window_bounds = array<i64: 29, 256>}, {pipeline_mode = #tpu.pipeline_mode<synchronous>, transform_indices = @transform_2, window_bounds = array<i64: 1, 256>}, {pipeline_mode = #tpu.pipeline_mode<synchronous>, transform_indices = @transform_3, window_bounds = array<i64: 256, 128>}, {pipeline_mode = #tpu.pipeline_mode<synchronous>, transform_indices = @transform_4, window_bounds = array<i64: 1, 128>}, {pipeline_mode = #tpu.pipeline_mode<synchronous>, transform_indices = @transform_5, window_bounds = array<i64: 1, 128>}, {pipeline_mode = #tpu.pipeline_mode<synchronous>, transform_indices = @transform_6, window_bounds = array<i64: 1, 1>}, {transform_indices = @transform_7, window_bounds = array<i64: 1, 128>}]} {
    %c0 = arith.constant 0 : index
    %c0_0 = arith.constant 0 : index
    %0 = vector.load %arg1[%c0, %c0_0] : memref<128x29xf32, #tpu.memory_space<vmem>>, vector<128x29xf32>
    %c0_1 = arith.constant 0 : index
    %c0_2 = arith.constant 0 : index
    %1 = vector.load %arg2[%c0_1, %c0_2] : memref<29x256xf32, #tpu.memory_space<vmem>>, vector<29x256xf32>
    %cst = arith.constant dense<0.000000e+00> : vector<128x256xf32>
    %2 = tpu.matmul %0, %1, %cst {dimension_numbers = #tpu.dot_dimension_numbers<[1], [0], [0], [1], [0, 0, 1, 1], [], []>} : vector<128x29xf32>, vector<29x256xf32>, vector<128x256xf32> -> vector<128x256xf32>
    %c0_3 = arith.constant 0 : index
    %c0_4 = arith.constant 0 : index
    %3 = vector.load %arg3[%c0_3, %c0_4] : memref<1x256xf32, #tpu.memory_space<vmem>>, vector<1x256xf32>
    %4 = vector.broadcast %3 : vector<1x256xf32> to vector<128x256xf32>
    %5 = arith.addf %2, %4 : vector<128x256xf32>
    %cst_5 = arith.constant 0.000000e+00 : f32
    %6 = vector.broadcast %cst_5 : f32 to vector<128x256xf32>
    %7 = arith.maximumf %5, %6 : vector<128x256xf32>
    %c0_6 = arith.constant 0 : index
    %c0_7 = arith.constant 0 : index
    %8 = vector.load %arg4[%c0_6, %c0_7] : memref<256x128xf32, #tpu.memory_space<vmem>>, vector<256x128xf32>
    %cst_8 = arith.constant dense<0.000000e+00> : vector<128x128xf32>
    %9 = tpu.matmul %7, %8, %cst_8 {dimension_numbers = #tpu.dot_dimension_numbers<[1], [0], [0], [1], [0, 0, 1, 1], [], []>} : vector<128x256xf32>, vector<256x128xf32>, vector<128x128xf32> -> vector<128x128xf32>
    %c0_9 = arith.constant 0 : index
    %c0_10 = arith.constant 0 : index
    %10 = vector.load %arg5[%c0_9, %c0_10] : memref<1x128xf32, #tpu.memory_space<vmem>>, vector<1x128xf32>
    %11 = vector.broadcast %10 : vector<1x128xf32> to vector<128x128xf32>
    %12 = arith.addf %9, %11 : vector<128x128xf32>
    %cst_11 = arith.constant 0.000000e+00 : f32
    %13 = vector.broadcast %cst_11 : f32 to vector<128x128xf32>
    %14 = arith.maximumf %12, %13 : vector<128x128xf32>
    %c0_12 = arith.constant 0 : index
    %c0_13 = arith.constant 0 : index
    %15 = vector.load %arg6[%c0_12, %c0_13] : memref<1x128xf32, #tpu.memory_space<vmem>>, vector<1x128xf32>
    %cst_14 = arith.constant dense<0.000000e+00> : vector<1x128xf32>
    %16 = tpu.matmul %15, %14, %cst_14 {dimension_numbers = #tpu.dot_dimension_numbers<[1], [1], [0], [0], [0, 0, 1, 0], [], []>} : vector<1x128xf32>, vector<128x128xf32>, vector<1x128xf32> -> vector<1x128xf32>
    %c0_15 = arith.constant 0 : index
    %c0_16 = arith.constant 0 : index
    %17 = vector.load %arg7[%c0_15, %c0_16] : memref<1x1xf32, #tpu.memory_space<vmem>>, vector<1x1xf32>
    %18 = vector.broadcast %17 : vector<1x1xf32> to vector<1x128xf32>
    %19 = arith.addf %16, %18 : vector<1x128xf32>
    %c0_17 = arith.constant 0 : index
    %c0_18 = arith.constant 0 : index
    %20 = vector.load %arg8[%c0_17, %c0_18] : memref<1x128xf32, #tpu.memory_space<vmem>>, vector<1x128xf32>
    tpu.vector_store %arg8[%c0_17, %c0_18], %19 {strides = array<i32>} : memref<1x128xf32, #tpu.memory_space<vmem>>, vector<1x128xf32>,
    return
  }
  func.func @transform_0(%arg0: i32) -> (i32, i32) {
    %c0_i32 = arith.constant 0 : i32
    %c0_i32_0 = arith.constant 0 : i32
    return %arg0, %c0_i32 : i32, i32
  }
  func.func @transform_1(%arg0: i32) -> (i32, i32) {
    %c0_i32 = arith.constant 0 : i32
    %c0_i32_0 = arith.constant 0 : i32
    %c0_i32_1 = arith.constant 0 : i32
    return %c0_i32, %c0_i32_0 : i32, i32
  }
  func.func @transform_2(%arg0: i32) -> (i32, i32) {
    %c0_i32 = arith.constant 0 : i32
    %c0_i32_0 = arith.constant 0 : i32
    %c0_i32_1 = arith.constant 0 : i32
    return %c0_i32, %c0_i32_0 : i32, i32
  }
  func.func @transform_3(%arg0: i32) -> (i32, i32) {
    %c0_i32 = arith.constant 0 : i32
    %c0_i32_0 = arith.constant 0 : i32
    %c0_i32_1 = arith.constant 0 : i32
    return %c0_i32, %c0_i32_0 : i32, i32
  }
  func.func @transform_4(%arg0: i32) -> (i32, i32) {
    %c0_i32 = arith.constant 0 : i32
    %c0_i32_0 = arith.constant 0 : i32
    %c0_i32_1 = arith.constant 0 : i32
    return %c0_i32, %c0_i32_0 : i32, i32
  }
  func.func @transform_5(%arg0: i32) -> (i32, i32) {
    %c0_i32 = arith.constant 0 : i32
    %c0_i32_0 = arith.constant 0 : i32
    %c0_i32_1 = arith.constant 0 : i32
    return %c0_i32, %c0_i32_0 : i32, i32
  }
  func.func @transform_6(%arg0: i32) -> (i32, i32) {
    %c0_i32 = arith.constant 0 : i32
    %c0_i32_0 = arith.constant 0 : i32
    %c0_i32_1 = arith.constant 0 : i32
    return %c0_i32, %c0_i32_0 : i32, i32
  }
  func.func @transform_7(%arg0: i32) -> (i32, i32) {
    %c0_i32 = arith.constant 0 : i32
    %c0_i32_0 = arith.constant 0 : i32
    return %c0_i32, %arg0 : i32, i32
  }
}

</mosaic_0001>

<bundles_post_ra>
// kernel: tpu_custom_call.1
= control target key start
LH: loop header
LB: loop body
LE: loop exit
PB: predicated region body
PF: predicated region fallthrough
CT: control target
= control target key end

     0   :  { %s869_s0 = inlined_call_operand.vmem [shape: f32[128,29], index: 0, kind: input, shape index: {}]   ;;  %s870_s1 = inlined_call_operand.vmem [shape: f32[29,256], index: 1, kind: input, shape index: {}]   ;;  %s871_s2 = inlined_call_operand.vmem [shape: f32[1,256], index: 2, kind: input, shape index: {}]   ;;  %s872_s3 = inlined_call_operand.hbm [shape: f32[256,128], index: 3, kind: input, shape index: {}]   ;;  %s873_s4 = inlined_call_operand.vmem [shape: f32[1,128], index: 4, kind: input, shape index: {}]   ;;  %s874_s5 = inlined_call_operand.vmem [shape: f32[1,128], index: 5, kind: input, shape index: {}]   ;;  %s875_s6 = inlined_call_operand.<no memory space> [shape: f32[1,1], index: 6, kind: input, shape index: {}]   ;;  %s876_s7 = inlined_call_operand.hbm [shape: f32[1,128], index: 7, kind: output, shape index: {}]  }
   0x1   :  { %v12_v0 = vstv %s875_s6 }
   0x2   :  { %13 = vst [vmem:[#allocation2] sm:$0x1] %v12_v0 }
   0x3   :  { %14 = vsyncpa [#allocation4], 0 }
   0x4   :  { %15 = vsyncpa [#allocation5], 0  ;;  %s26_s28 = sshll.u32 %s872_s3, 4  ;;  %s630_s29 = smov [#allocation3]   ;;  %s27_s28 = int_to_ptr.hbm [resolvable:$true] %s26_s28 }
   0x5   :  { %s28_s30 = sshll.u32 %s630_s29, 4  ;;  %s631_s8 = smov 128   ;;  %s29_s30 = int_to_ptr.vmem [resolvable:$true] %s28_s30 }
   0x6   :  { %s632_s9 = smov 8  }
   0x7   :  { %34 = dma.hbm_to_vmem [thread:$0]  %s27_s28, 4096, %s29_s30, [#allocation4], %s631_s8, %s631_s8, %s632_s9  }
   0x8   :  { %626 = dma.done.wait [#allocation4], 4096  }
   0x9   :  { %627 = vsyncadd [#allocation4], 4294963200  ;;  %vm124_vm0 = vcmask 1044480   ;;  %v67_v1 = vld [vmem:[%s870_s1 + $0x30] sm:$0x1f]  ;;  %v65_v3 = vld [vmem:[%s870_s1 + $0x20] sm:$0xff] }
   0xa   :  { %v68_v2 = vld [vmem:[%s870_s1 + $0x38] sm:$0x1f]  ;;  %521 = vmatpush.msk.msra.mxu0 %vm124_vm0, %v67_v1  ;;  %v66_v4 = vld [vmem:[%s870_s1 + $0x28] sm:$0xff]  ;;  %v63_v5 = vld [vmem:[%s870_s1 + $0x10] sm:$0xff]  ;;  %vm75_vm1 = vcmask 236544   ;;  %s634_s9 = smov [#allocation6]  }
   0xb   :  { %538 = vmatpush.msk.msra.mxu1 %vm124_vm0, %v68_v2  ;;  %v64_v6 = vld [vmem:[%s870_s1 + $0x18] sm:$0xff]  ;;  %v61_v7 = vld [vmem:[%s870_s1] sm:$0xff]  ;;  %v62_v8 = vld [vmem:[%s870_s1 + $0x8] sm:$0xff]  ;;  %s509_s10 = sshll.u32 %s634_s9, 4  ;;  %s511_s12 = sshll.u32 %s876_s7, 4  ;;  %s510_s10 = int_to_ptr.vmem [resolvable:$true] %s509_s10  ;;  %s512_s12 = int_to_ptr.hbm [resolvable:$true] %s511_s12 }
   0xc   :  { %144 = vmatpush.msra.mxu0 %v65_v3  ;;  %v45_v9 = vld [vmem:[%s869_s0] sm:$0xff]  ;;  %v46_v10 = vld [vmem:[%s869_s0 + $0x8] sm:$0xff]  ;;  %v47_v11 = vld [vmem:[%s869_s0 + $0x10] sm:$0xff] }
   0xd   :  { %209 = vmatpush.msra.mxu1 %v66_v4  ;;  %v48_v12 = vld [vmem:[%s869_s0 + $0x18] sm:$0xff]  ;;  %v49_v13 = vld [vmem:[%s869_s0 + $0x20] sm:$0xff]  ;;  %v50_v14 = vld [vmem:[%s869_s0 + $0x28] sm:$0xff] }
   0xe   :  { %145 = vmatpush.msra.mxu0 %v63_v5  ;;  %v51_v15 = vld [vmem:[%s869_s0 + $0x30] sm:$0xff]  ;;  %v52_v16 = vld [vmem:[%s869_s0 + $0x38] sm:$0xff]  ;;  %v53_v17 = vld [vmem:[%s869_s0 + $0x40] sm:$0xff] }
   0xf   :  { %210 = vmatpush.msra.mxu1 %v64_v6  ;;  %v308_v18 = vld [vmem:[#allocation3 + $0x78] sm:$0xff]  ;;  %v307_v20 = vld [vmem:[#allocation3 + $0x70] sm:$0xff]  ;;  %v306_v22 = vld [vmem:[#allocation3 + $0x68] sm:$0xff] }
  0x10   :  { %146 = vmatpush.msra.mxu0 %v61_v7  ;;  %v324_v19 = vld [vmem:[#allocation3 + $0xf8] sm:$0xff]  ;;  %v323_v21 = vld [vmem:[#allocation3 + $0xf0] sm:$0xff]  ;;  %v322_v23 = vld [vmem:[#allocation3 + $0xe8] sm:$0xff]  ;;  %555 = vmatpush.msra.mxu2 %v308_v18 }
  0x11   :  { %211 = vmatpush.msra.mxu1 %v62_v8  ;;  %522 = vmatmul.msk.f32.vlgmr.msra.gmra.mxu0 %vm75_vm1, %v45_v9  ;;  %v54_v24 = vld [vmem:[%s869_s0 + $0x48] sm:$0xff]  ;;  %v304_v27 = vld [vmem:[#allocation3 + $0x58] sm:$0xff]  ;;  %v303_v29 = vld [vmem:[#allocation3 + $0x50] sm:$0xff] }
  0x12   :  { %539 = vmatmul.msk.f32.vlgmr.msra.gmra.mxu1 %vm75_vm1, %v45_v9  ;;  %394 = vmatpush.msra.mxu3 %v324_v19  ;;  %v305_v25 = vld [vmem:[#allocation3 + $0x60] sm:$0xff]  ;;  %v320_v28 = vld [vmem:[#allocation3 + $0xd8] sm:$0xff]  ;;  %v319_v30 = vld [vmem:[#allocation3 + $0xd0] sm:$0xff] }
  0x13   :  { %329 = vmatpush.msrb.mxu1 %v308_v18  ;;  %556 = vmatpush.msra.mxu2 %v307_v20  ;;  %v321_v26 = vld [vmem:[#allocation3 + $0xe0] sm:$0xff]  ;;  %v302_v31 = vld [vmem:[#allocation3 + $0x48] sm:$0xff]  ;;  %v300_v36 = vld [vmem:[#allocation3 + $0x38] sm:$0xff] }
  0x14   :  { %395 = vmatpush.msra.mxu3 %v323_v21  ;;  %v318_v32 = vld [vmem:[#allocation3 + $0xc8] sm:$0xff]  ;;  %v301_v34 = vld [vmem:[#allocation3 + $0x40] sm:$0xff]  ;;  %v316_v37 = vld [vmem:[#allocation3 + $0xb8] sm:$0xff] }
  0x15   :  { %330 = vmatpush.msrb.mxu1 %v307_v20  ;;  %557 = vmatpush.msra.mxu2 %v306_v22  ;;  %v55_v33 = vld [vmem:[%s869_s0 + $0x50] sm:$0xff]  ;;  %v317_v35 = vld [vmem:[#allocation3 + $0xc0] sm:$0xff]  ;;  %v56_v42 = vld [vmem:[%s869_s0 + $0x58] sm:$0xff] }
  0x16   :  { %396 = vmatpush.msra.mxu3 %v322_v23  ;;  %v299_v38 = vld [vmem:[#allocation3 + $0x30] sm:$0xff]  ;;  %v298_v40 = vld [vmem:[#allocation3 + $0x28] sm:$0xff]  ;;  %v297_v43 = vld [vmem:[#allocation3 + $0x20] sm:$0xff] }
  0x17   :  { %331 = vmatpush.msrb.mxu1 %v306_v22  ;;  %558 = vmatpush.msra.mxu2 %v305_v25  ;;  %v315_v39 = vld [vmem:[#allocation3 + $0xb0] sm:$0xff]  ;;  %v314_v41 = vld [vmem:[#allocation3 + $0xa8] sm:$0xff]  ;;  %v313_v44 = vld [vmem:[#allocation3 + $0xa0] sm:$0xff] }
  0x18   :  { %397 = vmatpush.msra.mxu3 %v321_v26  ;;  %v296_v45 = vld [vmem:[#allocation3 + $0x18] sm:$0xff]  ;;  %v295_v47 = vld [vmem:[#allocation3 + $0x10] sm:$0xff]  ;;  %v294_v50 = vld [vmem:[#allocation3 + $0x8] sm:$0xff] }
  0x19   :  { %523 = vmatmul.msk.f32.gmra.mxu0 %vm75_vm1, %v46_v10  ;;  %332 = vmatpush.msrb.mxu1 %v305_v25  ;;  %v312_v46 = vld [vmem:[#allocation3 + $0x98] sm:$0xff]  ;;  %v311_v48 = vld [vmem:[#allocation3 + $0x90] sm:$0xff]  ;;  %v310_v51 = vld [vmem:[#allocation3 + $0x88] sm:$0xff] }
  0x1a   :  { %540 = vmatmul.msk.f32.gmra.mxu1 %vm75_vm1, %v46_v10  ;;  %398 = vmatpush.msra.mxu3 %v320_v28  ;;  %v57_v49 = vld [vmem:[%s869_s0 + $0x60] sm:$0xff]  ;;  %v58_v54 = vld [vmem:[%s869_s0 + $0x68] sm:$0xff]  ;;  %v59_v55 = vld [vmem:[%s869_s0 + $0x70] sm:$0xff] }
  0x1b   :  { %333 = vmatpush.msrb.mxu1 %v304_v27  ;;  %559 = vmatpush.msra.mxu2 %v304_v27  ;;  %v293_v52 = vld [vmem:[#allocation3] sm:$0xff]  ;;  %v60_v56 = vld [vmem:[%s869_s0 + $0x78] sm:$0xff] }
  0x1c   :  { %399 = vmatpush.msra.mxu3 %v319_v30  ;;  %v309_v53 = vld [vmem:[#allocation3 + $0x80] sm:$0xff] }
  0x1d   :  { %334 = vmatpush.msrb.mxu1 %v303_v29  ;;  %560 = vmatpush.msra.mxu2 %v303_v29  ;;  %v69_v57 = vld [vmem:[%s871_s2] sm:$0x3] }
  0x1e   :  { %400 = vmatpush.msra.mxu3 %v318_v32  ;;  %v788_v58 = vperm.slane %v69_v57, 0  ;;  %v790_v59 = vperm.slane %v69_v57, 1 }
  0x1f   :  { %335 = vmatpush.msrb.mxu1 %v302_v31  ;;  %561 = vmatpush.msra.mxu2 %v302_v31 }
  0x20   :  { %401 = vmatpush.msra.mxu3 %v317_v35 }
  0x21   :  { %524 = vmatmul.msk.f32.gmra.mxu0 %vm75_vm1, %v47_v11  ;;  %336 = vmatpush.msrb.mxu1 %v301_v34 }
  0x22   :  { %541 = vmatmul.msk.f32.gmra.mxu1 %vm75_vm1, %v47_v11  ;;  %402 = vmatpush.msra.mxu3 %v316_v37 }
  0x23   :  { %337 = vmatpush.msrb.mxu1 %v300_v36  ;;  %562 = vmatpush.msra.mxu2 %v301_v34 }
  0x24   :  { %403 = vmatpush.msra.mxu3 %v315_v39 }
  0x25   :  { %338 = vmatpush.msrb.mxu1 %v299_v38  ;;  %563 = vmatpush.msra.mxu2 %v300_v36 }
  0x26   :  { %404 = vmatpush.msra.mxu3 %v314_v41 }
  0x27   :  { %339 = vmatpush.msrb.mxu1 %v298_v40  ;;  %564 = vmatpush.msra.mxu2 %v299_v38 }
  0x28   :  { %405 = vmatpush.msra.mxu3 %v313_v44 }
  0x29   :  { %525 = vmatmul.msk.f32.gmra.mxu0 %vm75_vm1, %v48_v12  ;;  %340 = vmatpush.msrb.mxu1 %v297_v43 }
  0x2a   :  { %542 = vmatmul.msk.f32.gmra.mxu1 %vm75_vm1, %v48_v12  ;;  %406 = vmatpush.msra.mxu3 %v312_v46 }
  0x2b   :  { %341 = vmatpush.msrb.mxu1 %v296_v45  ;;  %565 = vmatpush.msra.mxu2 %v298_v40 }
  0x2c   :  { %407 = vmatpush.msra.mxu3 %v311_v48 }
  0x2d   :  { %342 = vmatpush.msrb.mxu1 %v295_v47  ;;  %566 = vmatpush.msra.mxu2 %v297_v43 }
  0x2e   :  { %408 = vmatpush.msra.mxu3 %v310_v51 }
  0x2f   :  { %343 = vmatpush.msrb.mxu1 %v294_v50  ;;  %567 = vmatpush.msra.mxu2 %v296_v45 }
  0x30   :  { %409 = vmatpush.msra.mxu3 %v309_v53 }
  0x31   :  { %526 = vmatmul.msk.f32.gmra.mxu0 %vm75_vm1, %v49_v13  ;;  %344 = vmatpush.msrb.mxu1 %v293_v52 }
  0x32   :  { %543 = vmatmul.msk.f32.gmra.mxu1 %vm75_vm1, %v49_v13  ;;  %568 = vmatpush.msra.mxu2 %v295_v47 }
  0x34   :  { %569 = vmatpush.msra.mxu2 %v294_v50 }
  0x36   :  { %570 = vmatpush.msra.mxu2 %v293_v52 }
  0x39   :  { %527 = vmatmul.msk.f32.gmra.mxu0 %vm75_vm1, %v50_v14 }
  0x3a   :  { %544 = vmatmul.msk.f32.gmra.mxu1 %vm75_vm1, %v50_v14 }
  0x41   :  { %528 = vmatmul.msk.f32.gmra.mxu0 %vm75_vm1, %v51_v15 }
  0x42   :  { %545 = vmatmul.msk.f32.gmra.mxu1 %vm75_vm1, %v51_v15 }
  0x49   :  { %529 = vmatmul.msk.f32.gmra.mxu0 %vm75_vm1, %v52_v16 }
  0x4a   :  { %546 = vmatmul.msk.f32.gmra.mxu1 %vm75_vm1, %v52_v16 }
  0x51   :  { %530 = vmatmul.msk.f32.gmra.mxu0 %vm75_vm1, %v53_v17 }
  0x52   :  { %547 = vmatmul.msk.f32.gmra.mxu1 %vm75_vm1, %v53_v17 }
  0x59   :  { %531 = vmatmul.msk.f32.gmra.mxu0 %vm75_vm1, %v54_v24 }
  0x5a   :  { %548 = vmatmul.msk.f32.gmra.mxu1 %vm75_vm1, %v54_v24 }
  0x61   :  { %532 = vmatmul.msk.f32.gmra.mxu0 %vm75_vm1, %v55_v33 }
  0x62   :  { %549 = vmatmul.msk.f32.gmra.mxu1 %vm75_vm1, %v55_v33 }
  0x69   :  { %533 = vmatmul.msk.f32.gmra.mxu0 %vm75_vm1, %v56_v42 }
  0x6a   :  { %550 = vmatmul.msk.f32.gmra.mxu1 %vm75_vm1, %v56_v42 }
  0x71   :  { %534 = vmatmul.msk.f32.gmra.mxu0 %vm75_vm1, %v57_v49 }
  0x72   :  { %551 = vmatmul.msk.f32.gmra.mxu1 %vm75_vm1, %v57_v49 }
  0x79   :  { %535 = vmatmul.msk.f32.gmra.mxu0 %vm75_vm1, %v58_v54 }
  0x7a   :  { %552 = vmatmul.msk.f32.gmra.mxu1 %vm75_vm1, %v58_v54 }
  0x81   :  { %536 = vmatmul.msk.f32.gmra.mxu0 %vm75_vm1, %v59_v55 }
  0x82   :  { %553 = vmatmul.msk.f32.gmra.mxu1 %vm75_vm1, %v59_v55 }
  0x89   :  { %537 = vmatmul.msk.f32.gmra.mxu0 %vm75_vm1, %v60_v56 }
  0x8a   :  { %554 = vmatmul.msk.f32.gmra.mxu1 %vm75_vm1, %v60_v56 }
  0x8e   :  { %v148_v60 = vpop.f32.mrf.mxu0 }
  0x8f   :  { %v213_v61 = vpop.f32.mrf.mxu1  ;;  %v149_v62 = vadd.f32 %v148_v60, %v788_v58 }
  0x90   :  { %v214_v63 = vadd.f32 %v213_v61, %v790_v59 }
  0x91   :  { %v261_v0 = vmax.f32 %v149_v62, 0.0 }
  0x92   :  { %v262_v1 = vmax.f32 %v214_v63, 0.0 }
  0x93   :  { %345 = vmatmul.f32.vlgmr.msrb.gmra.mxu1 %v261_v0 }
  0x94   :  { %410 = vmatmul.f32.vlgmr.msra.gmra.mxu3 %v262_v1 }
  0x96   :  { %v151_v2 = vpop.f32.mrf.mxu0 }
  0x97   :  { %v216_v3 = vpop.f32.mrf.mxu1  ;;  %v152_v4 = vadd.f32 %v151_v2, %v788_v58 }
  0x98   :  { %v217_v5 = vadd.f32 %v216_v3, %v790_v59 }
  0x99   :  { %v263_v6 = vmax.f32 %v152_v4, 0.0 }
  0x9a   :  { %v264_v7 = vmax.f32 %v217_v5, 0.0 }
  0x9b   :  { %348 = vmatmul.f32.vlgmr.msra.gmra.mxu2 %v263_v6 }
  0x9c   :  { %413 = vmatmul.f32.gmra.mxu3 %v264_v7 }
  0x9e   :  { %v154_v8 = vpop.f32.mrf.mxu0 }
  0x9f   :  { %v219_v9 = vpop.f32.mrf.mxu1  ;;  %v155_v10 = vadd.f32 %v154_v8, %v788_v58 }
  0xa0   :  { %v220_v11 = vadd.f32 %v219_v9, %v790_v59 }
  0xa1   :  { %v265_v12 = vmax.f32 %v155_v10, 0.0 }
  0xa2   :  { %v266_v13 = vmax.f32 %v220_v11, 0.0 }
  0xa3   :  { %351 = vmatmul.f32.gmra.mxu2 %v265_v12 }
  0xa4   :  { %416 = vmatmul.f32.gmra.mxu3 %v266_v13 }
  0xa6   :  { %v157_v14 = vpop.f32.mrf.mxu0 }
  0xa7   :  { %v222_v15 = vpop.f32.mrf.mxu1  ;;  %v158_v16 = vadd.f32 %v157_v14, %v788_v58 }
  0xa8   :  { %v223_v17 = vadd.f32 %v222_v15, %v790_v59 }
  0xa9   :  { %v267_v18 = vmax.f32 %v158_v16, 0.0 }
  0xaa   :  { %v268_v19 = vmax.f32 %v223_v17, 0.0 }
  0xab   :  { %354 = vmatmul.f32.gmra.mxu2 %v267_v18 }
  0xac   :  { %419 = vmatmul.f32.gmra.mxu3 %v268_v19 }
  0xae   :  { %v160_v20 = vpop.f32.mrf.mxu0 }
  0xaf   :  { %v225_v21 = vpop.f32.mrf.mxu1  ;;  %v161_v22 = vadd.f32 %v160_v20, %v788_v58 }
  0xb0   :  { %v226_v23 = vadd.f32 %v225_v21, %v790_v59 }
  0xb1   :  { %v269_v24 = vmax.f32 %v161_v22, 0.0 }
  0xb2   :  { %v270_v25 = vmax.f32 %v226_v23, 0.0 }
  0xb3   :  { %357 = vmatmul.f32.gmra.mxu2 %v269_v24 }
  0xb4   :  { %422 = vmatmul.f32.gmra.mxu3 %v270_v25 }
  0xb6   :  { %v163_v26 = vpop.f32.mrf.mxu0 }
  0xb7   :  { %v228_v27 = vpop.f32.mrf.mxu1  ;;  %v164_v28 = vadd.f32 %v163_v26, %v788_v58 }
  0xb8   :  { %v229_v29 = vadd.f32 %v228_v27, %v790_v59 }
  0xb9   :  { %v271_v30 = vmax.f32 %v164_v28, 0.0 }
  0xba   :  { %v272_v31 = vmax.f32 %v229_v29, 0.0 }
  0xbb   :  { %360 = vmatmul.f32.gmra.mxu2 %v271_v30 }
  0xbc   :  { %425 = vmatmul.f32.gmra.mxu3 %v272_v31  ;;  %v829_v31 = vld [vmem:[%s873_s4] ss:$0 sm:$0xff] }
  0xbe   :  { %v166_v32 = vpop.f32.mrf.mxu0 }
  0xbf   :  { %v231_v33 = vpop.f32.mrf.mxu1  ;;  %v167_v34 = vadd.f32 %v166_v32, %v788_v58 }
  0xc0   :  { %v232_v35 = vadd.f32 %v231_v33, %v790_v59 }
  0xc1   :  { %v273_v36 = vmax.f32 %v167_v34, 0.0 }
  0xc2   :  { %v274_v37 = vmax.f32 %v232_v35, 0.0 }
  0xc3   :  { %363 = vmatmul.f32.gmra.mxu2 %v273_v36 }
  0xc4   :  { %428 = vmatmul.f32.gmra.mxu3 %v274_v37 }
  0xc6   :  { %v169_v38 = vpop.f32.mrf.mxu0 }
  0xc7   :  { %v234_v39 = vpop.f32.mrf.mxu1  ;;  %v170_v40 = vadd.f32 %v169_v38, %v788_v58 }
  0xc8   :  { %v235_v41 = vadd.f32 %v234_v39, %v790_v59 }
  0xc9   :  { %v275_v42 = vmax.f32 %v170_v40, 0.0 }
  0xca   :  { %v276_v43 = vmax.f32 %v235_v41, 0.0 }
  0xcb   :  { %366 = vmatmul.f32.gmra.mxu2 %v275_v42 }
  0xcc   :  { %431 = vmatmul.f32.gmra.mxu3 %v276_v43 }
  0xce   :  { %v172_v44 = vpop.f32.mrf.mxu0 }
  0xcf   :  { %v237_v45 = vpop.f32.mrf.mxu1  ;;  %v173_v46 = vadd.f32 %v172_v44, %v788_v58 }
  0xd0   :  { %v238_v47 = vadd.f32 %v237_v45, %v790_v59 }
  0xd1   :  { %v277_v48 = vmax.f32 %v173_v46, 0.0 }
  0xd2   :  { %v278_v49 = vmax.f32 %v238_v47, 0.0 }
  0xd3   :  { %369 = vmatmul.f32.gmra.mxu2 %v277_v48 }
  0xd4   :  { %434 = vmatmul.f32.gmra.mxu3 %v278_v49 }
  0xd6   :  { %v175_v50 = vpop.f32.mrf.mxu0 }
  0xd7   :  { %v240_v51 = vpop.f32.mrf.mxu1  ;;  %v176_v52 = vadd.f32 %v175_v50, %v788_v58 }
  0xd8   :  { %v241_v53 = vadd.f32 %v240_v51, %v790_v59 }
  0xd9   :  { %v279_v54 = vmax.f32 %v176_v52, 0.0 }
  0xda   :  { %v280_v55 = vmax.f32 %v241_v53, 0.0 }
  0xdb   :  { %372 = vmatmul.f32.gmra.mxu2 %v279_v54 }
  0xdc   :  { %437 = vmatmul.f32.gmra.mxu3 %v280_v55 }
  0xde   :  { %v178_v56 = vpop.f32.mrf.mxu0 }
  0xdf   :  { %v243_v57 = vpop.f32.mrf.mxu1  ;;  %v179_v60 = vadd.f32 %v178_v56, %v788_v58 }
  0xe0   :  { %v244_v61 = vadd.f32 %v243_v57, %v790_v59 }
  0xe1   :  { %v281_v62 = vmax.f32 %v179_v60, 0.0 }
  0xe2   :  { %v282_v63 = vmax.f32 %v244_v61, 0.0 }
  0xe3   :  { %375 = vmatmul.f32.gmra.mxu2 %v281_v62 }
  0xe4   :  { %440 = vmatmul.f32.gmra.mxu3 %v282_v63 }
  0xe6   :  { %v181_v0 = vpop.f32.mrf.mxu0 }
  0xe7   :  { %v246_v1 = vpop.f32.mrf.mxu1  ;;  %v182_v2 = vadd.f32 %v181_v0, %v788_v58 }
  0xe8   :  { %v247_v3 = vadd.f32 %v246_v1, %v790_v59 }
  0xe9   :  { %v283_v4 = vmax.f32 %v182_v2, 0.0 }
  0xea   :  { %v284_v5 = vmax.f32 %v247_v3, 0.0 }
  0xeb   :  { %378 = vmatmul.f32.gmra.mxu2 %v283_v4 }
  0xec   :  { %443 = vmatmul.f32.gmra.mxu3 %v284_v5 }
  0xee   :  { %v184_v6 = vpop.f32.mrf.mxu0 }
  0xef   :  { %v249_v7 = vpop.f32.mrf.mxu1  ;;  %v185_v8 = vadd.f32 %v184_v6, %v788_v58 }
  0xf0   :  { %v250_v9 = vadd.f32 %v249_v7, %v790_v59 }
  0xf1   :  { %v285_v10 = vmax.f32 %v185_v8, 0.0 }
  0xf2   :  { %v286_v11 = vmax.f32 %v250_v9, 0.0 }
  0xf3   :  { %381 = vmatmul.f32.gmra.mxu2 %v285_v10 }
  0xf4   :  { %446 = vmatmul.f32.gmra.mxu3 %v286_v11 }
  0xf6   :  { %v187_v12 = vpop.f32.mrf.mxu0 }
  0xf7   :  { %v252_v13 = vpop.f32.mrf.mxu1  ;;  %v188_v14 = vadd.f32 %v187_v12, %v788_v58 }
  0xf8   :  { %v253_v15 = vadd.f32 %v252_v13, %v790_v59 }
  0xf9   :  { %v287_v16 = vmax.f32 %v188_v14, 0.0 }
  0xfa   :  { %v288_v17 = vmax.f32 %v253_v15, 0.0 }
  0xfb   :  { %384 = vmatmul.f32.gmra.mxu2 %v287_v16 }
  0xfc   :  { %449 = vmatmul.f32.gmra.mxu3 %v288_v17 }
  0xfe   :  { %v190_v18 = vpop.f32.mrf.mxu0 }
  0xff   :  { %v255_v19 = vpop.f32.mrf.mxu1  ;;  %v191_v20 = vadd.f32 %v190_v18, %v788_v58 }
 0x100   :  { %v256_v21 = vadd.f32 %v255_v19, %v790_v59 }
 0x101   :  { %v289_v22 = vmax.f32 %v191_v20, 0.0 }
 0x102   :  { %v290_v23 = vmax.f32 %v256_v21, 0.0 }
 0x103   :  { %387 = vmatmul.f32.gmra.mxu2 %v289_v22 }
 0x104   :  { %452 = vmatmul.f32.gmra.mxu3 %v290_v23 }
 0x106   :  { %v193_v24 = vpop.f32.mrf.mxu0 }
 0x107   :  { %v258_v25 = vpop.f32.mrf.mxu1  ;;  %v194_v26 = vadd.f32 %v193_v24, %v788_v58 }
 0x108   :  { %v259_v27 = vadd.f32 %v258_v25, %v790_v59 }
 0x109   :  { %v291_v28 = vmax.f32 %v194_v26, 0.0 }
 0x10a   :  { %v292_v29 = vmax.f32 %v259_v27, 0.0 }
 0x10b   :  { %390 = vmatmul.f32.gmra.mxu2 %v291_v28 }
 0x10c   :  { %455 = vmatmul.f32.gmra.mxu3 %v292_v29 }
 0x117   :  { %v824_v30 = vpop.f32.mrf.mxu3 }
 0x11e   :  { %v349_v32 = vpop.f32.mrf.mxu2 }
 0x11f   :  { %v414_v33 = vpop.f32.mrf.mxu3  ;;  %v350_v34 = vadd.f32 %v829_v31, %v349_v32 }
 0x121   :  { %v832_v35 = vadd.f32 %v414_v33, %v350_v34 }
 0x126   :  { %v352_v58 = vpop.f32.mrf.mxu2 }
 0x127   :  { %v417_v36 = vpop.f32.mrf.mxu3  ;;  %v353_v59 = vadd.f32 %v829_v31, %v352_v58 }
 0x129   :  { %v835_v37 = vadd.f32 %v417_v36, %v353_v59 }
 0x12e   :  { %v355_v38 = vpop.f32.mrf.mxu2 }
 0x12f   :  { %v420_v39 = vpop.f32.mrf.mxu3  ;;  %v356_v40 = vadd.f32 %v829_v31, %v355_v38 }
 0x131   :  { %v838_v41 = vadd.f32 %v420_v39, %v356_v40  ;;  %v476_v39 = vld [vmem:[#allocation2] sm:$0x1]  ;;  %v633_v40 = vmov 0  }
 0x132   :  { %576 = vset.pattern.permute.xlu0 %v633_v40 }
 0x133   :  { %479 = vperm.xlu0 %576, %v476_v39  }
 0x136   :  { %v358_v42 = vpop.f32.mrf.mxu2 }
 0x137   :  { %v423_v43 = vpop.f32.mrf.mxu3  ;;  %v359_v44 = vadd.f32 %v829_v31, %v358_v42 }
 0x139   :  { %v841_v45 = vadd.f32 %v423_v43, %v359_v44 }
 0x13b   :  { %v463_v44 = vmax.f32 %v841_v45, 0.0  ;;  %v475_v45 = vld [vmem:[%s874_s5] sm:$0x1] }
 0x13e   :  { %v361_v46 = vpop.f32.mrf.mxu2 }
 0x13f   :  { %v426_v47 = vpop.f32.mrf.mxu3  ;;  %v362_v48 = vadd.f32 %v829_v31, %v361_v46  ;;  %v462_v46 = vmax.f32 %v838_v41, 0.0 }
 0x141   :  { %v844_v49 = vadd.f32 %v426_v47, %v362_v48  ;;  %v346_v47 = vpop.f32.mrf.mxu1  ;;  %v461_v48 = vmax.f32 %v835_v37, 0.0 }
 0x143   :  { %v464_v43 = vmax.f32 %v844_v49, 0.0 }
 0x146   :  { %v364_v50 = vpop.f32.mrf.mxu2 }
 0x147   :  { %v429_v51 = vpop.f32.mrf.mxu3  ;;  %v365_v52 = vadd.f32 %v829_v31, %v364_v50  ;;  %v347_v50 = vadd.f32 %v829_v31, %v346_v47 }
 0x149   :  { %v430_v53 = vadd.f32 %v429_v51, %v365_v52  ;;  %v412_v51 = vadd.f32 %v824_v30, %v347_v50  ;;  %v460_v52 = vmax.f32 %v832_v35, 0.0 }
 0x14b   :  { %v465_v42 = vmax.f32 %v430_v53, 0.0  ;;  %v459_v53 = vmax.f32 %v412_v51, 0.0 }
 0x14e   :  { %v367_v54 = vpop.f32.mrf.mxu2 }
 0x14f   :  { %v432_v55 = vpop.f32.mrf.mxu3  ;;  %v368_v56 = vadd.f32 %v829_v31, %v367_v54 }
 0x151   :  { %v433_v57 = vadd.f32 %v432_v55, %v368_v56 }
 0x153   :  { %v466_v38 = vmax.f32 %v433_v57, 0.0 }
 0x156   :  { %v370_v60 = vpop.f32.mrf.mxu2 }
 0x157   :  { %v435_v61 = vpop.f32.mrf.mxu3  ;;  %v371_v62 = vadd.f32 %v829_v31, %v370_v60 }
 0x159   :  { %v436_v63 = vadd.f32 %v435_v61, %v371_v62 }
 0x15b   :  { %v467_v59 = vmax.f32 %v436_v63, 0.0 }
 0x15e   :  { %v373_v0 = vpop.f32.mrf.mxu2 }
 0x15f   :  { %v438_v1 = vpop.f32.mrf.mxu3  ;;  %v374_v2 = vadd.f32 %v829_v31, %v373_v0 }
 0x161   :  { %v439_v3 = vadd.f32 %v438_v1, %v374_v2 }
 0x163   :  { %v468_v36 = vmax.f32 %v439_v3, 0.0 }
 0x166   :  { %v376_v4 = vpop.f32.mrf.mxu2 }
 0x167   :  { %v441_v5 = vpop.f32.mrf.mxu3  ;;  %v377_v28 = vadd.f32 %v829_v31, %v376_v4 }
 0x169   :  { %v442_v33 = vadd.f32 %v441_v5, %v377_v28 }
 0x16b   :  { %v469_v58 = vmax.f32 %v442_v33, 0.0 }
 0x16e   :  { %v379_v6 = vpop.f32.mrf.mxu2 }
 0x16f   :  { %v444_v7 = vpop.f32.mrf.mxu3  ;;  %v380_v25 = vadd.f32 %v829_v31, %v379_v6 }
 0x171   :  { %v445_v29 = vadd.f32 %v444_v7, %v380_v25 }
 0x173   :  { %v470_v34 = vmax.f32 %v445_v29, 0.0 }
 0x176   :  { %v382_v8 = vpop.f32.mrf.mxu2 }
 0x177   :  { %v447_v9 = vpop.f32.mrf.mxu3  ;;  %v383_v22 = vadd.f32 %v829_v31, %v382_v8 }
 0x179   :  { %v448_v26 = vadd.f32 %v447_v9, %v383_v22 }
 0x17b   :  { %v471_v32 = vmax.f32 %v448_v26, 0.0 }
 0x17e   :  { %v385_v10 = vpop.f32.mrf.mxu2 }
 0x17f   :  { %v450_v11 = vpop.f32.mrf.mxu3  ;;  %v386_v19 = vadd.f32 %v829_v31, %v385_v10 }
 0x181   :  { %v451_v23 = vadd.f32 %v450_v11, %v386_v19 }
 0x183   :  { %v472_v27 = vmax.f32 %v451_v23, 0.0 }
 0x186   :  { %v388_v12 = vpop.f32.mrf.mxu2 }
 0x187   :  { %v453_v13 = vpop.f32.mrf.mxu3  ;;  %v389_v16 = vadd.f32 %v829_v31, %v388_v12 }
 0x189   :  { %v454_v20 = vadd.f32 %v453_v13, %v389_v16 }
 0x18b   :  { %v473_v24 = vmax.f32 %v454_v20, 0.0 }
 0x18e   :  { %v391_v14 = vpop.f32.mrf.mxu2 }
 0x18f   :  { %v456_v15 = vpop.f32.mrf.mxu3  ;;  %v392_v17 = vadd.f32 %v829_v31, %v391_v14 }
 0x191   :  { %v457_v18 = vadd.f32 %v456_v15, %v392_v17 }
 0x193   :  { %v474_v21 = vmax.f32 %v457_v18, 0.0 }
 0x195   :  { %483 = vmatpush.xpose.msrb.mxu0 %v474_v21 }
 0x199   :  { %484 = vmatpush.xpose.msrb.mxu0 %v473_v24 }
 0x19d   :  { %485 = vmatpush.xpose.msrb.mxu0 %v472_v27 }
 0x1a1   :  { %486 = vmatpush.xpose.msrb.mxu0 %v471_v32 }
 0x1a5   :  { %487 = vmatpush.xpose.msrb.mxu0 %v470_v34  ;;  %v480_v41 = vpop.permute.xlu0 %479 }
 0x1a6   :  { %v482_v49 = vperm.slane %v480_v41, 0 }
 0x1a9   :  { %488 = vmatpush.xpose.msrb.mxu0 %v469_v58 }
 0x1ad   :  { %489 = vmatpush.xpose.msrb.mxu0 %v468_v36 }
 0x1b1   :  { %490 = vmatpush.xpose.msrb.mxu0 %v467_v59 }
 0x1b5   :  { %491 = vmatpush.xpose.msrb.mxu0 %v466_v38 }
 0x1b9   :  { %492 = vmatpush.xpose.msrb.mxu0 %v465_v42 }
 0x1bd   :  { %493 = vmatpush.xpose.msrb.mxu0 %v464_v43 }
 0x1c1   :  { %494 = vmatpush.xpose.msrb.mxu0 %v463_v44 }
 0x1c5   :  { %495 = vmatpush.xpose.msrb.mxu0 %v462_v46 }
 0x1c9   :  { %496 = vmatpush.xpose.msrb.mxu0 %v461_v48 }
 0x1cd   :  { %497 = vmatpush.xpose.msrb.mxu0 %v460_v52 }
 0x1d1   :  { %498 = vmatpush.xpose.msrb.mxu0 %v459_v53 }
 0x1d4   :  { %499 = vmatmul.f32.vlgmr.msrb.gmra.mxu0 %v475_v45 }
 0x251   :  { %v500_v31 = vpop.f32.mrf.mxu0 }
 0x252   :  { %v501_v30 = vadd.f32 %v500_v31, %v482_v49 }
 0x254   :  { %503 = vst [vmem:[#allocation6] sm:$0x1] %v501_v30 }
 0x255   :  { %514 = dma.vmem_to_hbm [thread:$0]  %s510_s10, 16, %s512_s12, [#allocation5]  }
 0x256   :  { %628 = dma.done.wait [#allocation5], 16  }
 0x257   :  { %629 = vsyncadd [#allocation5], 4294967280 }
 0x258   :  { %519 = vsyncpa [#allocation4], 1 }
 0x259   :  { %520 = vsyncpa [#allocation5], 1 }

</bundles_post_ra>
